<compile_context>
chip_gen: v7x
topology: tpu7x:2x2x1
jax: 0.10.0
libtpu: 0.0.40
codegen_flags: <defaults>
</compile_context>

<pallas_src>
import functools

import jax
import jax.numpy as jnp
from jax.experimental import pallas as pl
from jax.experimental.pallas import tpu as pltpu


# --------------------------------------------------------------------------- #
# Kernels
# --------------------------------------------------------------------------- #
def _lora_qkv_folded_kernel(x_ref, wcat_ref, bqkv_ref, bq_t_ref, bv_t_ref, o_ref,
                            *, dim, rank):
    """One (TM, C) row tile -> (TM, 3*dim) tile; base qkv + LoRA, down-proj folded."""
    x = x_ref[...]                                                     # (TM, C)

    # Single MXU pass over the concatenated weight: [W_qkv^T | A_q^T | A_v^T].
    acc = jnp.dot(x, wcat_ref[...], preferred_element_type=jnp.float32)  # (TM, 3*dim+2r)

    qkv = acc[:, : 3 * dim] + bqkv_ref[...].astype(jnp.float32)       # (TM, 3*dim)
    h = acc[:, 3 * dim:]                                              # (TM, 2r), f32

    # LoRA up-projection: no zero k-block, just the two real column adds.
    dq = jnp.dot(h[:, :rank].astype(bq_t_ref.dtype), bq_t_ref[...],
                 preferred_element_type=jnp.float32)                  # (TM, dim)
    dv = jnp.dot(h[:, rank:].astype(bv_t_ref.dtype), bv_t_ref[...],
                 preferred_element_type=jnp.float32)                  # (TM, dim)

    od = o_ref.dtype
    # dim is a multiple of 128 at real sizes -> these column stores stay lane-dense.
    o_ref[:, :dim] = (qkv[:, :dim] + dq).astype(od)                   # q block
    o_ref[:, dim:2 * dim] = qkv[:, dim:2 * dim].astype(od)            # k block
    o_ref[:, 2 * dim:] = (qkv[:, 2 * dim:] + dv).astype(od)           # v block


def _qkv_merged_kernel(x_ref, w_ref, b_ref, o_ref):
    """LoRA pre-merged into the base weight: plain fused linear."""
    acc = jnp.dot(x_ref[...], w_ref[...], preferred_element_type=jnp.float32)
    o_ref[...] = (acc + b_ref[...].astype(jnp.float32)).astype(o_ref.dtype)


# --------------------------------------------------------------------------- #
# One-time weight preparation (keep out of the per-call path)
# --------------------------------------------------------------------------- #
def prepare_lora_qkv_params(w_qkv, b_qkv, a_q, b_q, a_v, b_v, *,
                            merge_lora=False, compute_dtype=None):
    """Inputs follow PyTorch nn.Linear convention (out_features, in_features):
      w_qkv: (3*dim, dim), b_qkv: (3*dim,)
      a_q, a_v: (r, dim)   (LoRA down: dim -> r)
      b_q, b_v: (dim, r)   (LoRA up:   r -> dim)
    compute_dtype: e.g. jnp.bfloat16 (recommended on v6e/v7x). All prepared
    weights (incl. LoRA B) are cast to this dtype explicitly.
    merge_lora: fold the (frozen) LoRA adapters into the base weight; kernel then
    runs zero extra matmuls.
    """
    dim = w_qkv.shape[1]
    r = a_q.shape[0]
    dt = w_qkv.dtype if compute_dtype is None else compute_dtype
    cast = lambda a: jnp.asarray(a, dt)

    wqkv_t = cast(w_qkv).T                        # (dim, 3*dim)
    bias2d = cast(b_qkv).reshape(1, 3 * dim)      # broadcast over rows in-kernel

    if merge_lora:
        # W_eff^T = W^T with A^T B^T added into the q / v column blocks (f32 merge).
        w_eff = jnp.asarray(w_qkv, jnp.float32).T
        w_eff = w_eff.at[:, :dim].add(
            jnp.asarray(a_q, jnp.float32).T @ jnp.asarray(b_q, jnp.float32).T)
        w_eff = w_eff.at[:, 2 * dim:].add(
            jnp.asarray(a_v, jnp.float32).T @ jnp.asarray(b_v, jnp.float32).T)
        return ("merged", dim, r, w_eff.astype(dt), bias2d)

    # Fold the LoRA down-projections into the base matmul operand.
    a_cat_t = jnp.concatenate([cast(a_q), cast(a_v)], axis=0).T       # (dim, 2r)
    w_cat = jnp.concatenate([wqkv_t, a_cat_t], axis=1)                # (dim, 3*dim+2r)
    bq_t = cast(b_q).T                                                # (r, dim)
    bv_t = cast(b_v).T                                                # (r, dim)
    return ("folded", dim, r, w_cat, bias2d, bq_t, bv_t)


# --------------------------------------------------------------------------- #
# Tiling / VMEM policy
# --------------------------------------------------------------------------- #
def _chip_defaults(itemsize):
    """Generation-aware VMEM limit and row-tile cap."""
    phys = 64 * 1024 * 1024  # conservative fallback (v7x physical VMEM)
    try:
        phys = int(getattr(pltpu.get_tpu_info(), "vmem_capacity_bytes", phys))
    except Exception:
        pass
    if phys >= 100 * 1024 * 1024:          # v5e / v6e: 128 MiB physical
        return 96 * 1024 * 1024, 1024
    # v7x: 64 MiB physical -- keep weights + tiles + f32 scratch well inside it.
    return 48 * 1024 * 1024, (512 if itemsize <= 2 else 256)


def _choose_tm(M, tm_cap):
    """Row tile: multiple of 8 (or == M), <= tm_cap, >= 4 grid steps when M is large."""
    if M <= min(tm_cap, 1024):
        return M                            # single full-extent tile
    tm = min(tm_cap, pl.cdiv(M, 4))         # >= 4 steps (>= 2 per TensorCore on v7x)
    return max(8, (tm // 8) * 8)


# --------------------------------------------------------------------------- #
# Wrapper
# --------------------------------------------------------------------------- #
def lora_qkv(x, params, *, tm=None):
    """x: (B, N, C); params from prepare_lora_qkv_params(). Returns (B, N, 3*C)."""
    mode, dim, r = params[0], params[1], params[2]
    B, N, C = x.shape
    if C != dim:
        raise ValueError(f"x feature dim {C} != qkv in_features {dim}")
    M = B * N
    x2d = x.reshape(M, C)

    vmem_limit, tm_cap = _chip_defaults(x2d.dtype.itemsize)
    if tm is not None:
        tm_cap = tm
    TM = _choose_tm(M, tm_cap)

    const = lambda a: pl.BlockSpec(a.shape, lambda i: (0, 0))  # weight-stationary
    x_spec = pl.BlockSpec((TM, C), lambda i: (i, 0))
    out_spec = pl.BlockSpec((TM, 3 * dim), lambda i: (i, 0))
    out_shape = jax.ShapeDtypeStruct((M, 3 * dim), x.dtype)
    # NOTE: on v7x, if profiling shows one TensorCore idle, switch the M axis to
    # pltpu.CORE_PARALLEL; plain "parallel" is kept here as the safe default.
    cparams = pltpu.CompilerParams(
        dimension_semantics=("parallel",), vmem_limit_bytes=vmem_limit)
    grid = (pl.cdiv(M, TM),)

    if mode == "merged":
        _, _, _, w_eff, bias2d = params
        flops = 2 * M * C * 3 * dim
        bytes_accessed = (x2d.size * x2d.dtype.itemsize
                          + M * 3 * dim * x.dtype.itemsize
                          + w_eff.size * w_eff.dtype.itemsize
                          + bias2d.size * bias2d.dtype.itemsize)
        out2d = pl.pallas_call(
            _qkv_merged_kernel,
            out_shape=out_shape,
            grid=grid,
            in_specs=[x_spec, const(w_eff), const(bias2d)],
            out_specs=out_spec,
            compiler_params=cparams,
            cost_estimate=pl.CostEstimate(
                flops=flops, transcendentals=0, bytes_accessed=bytes_accessed),
        )(x2d, w_eff, bias2d)
    else:
        _, _, _, w_cat, bias2d, bq_t, bv_t = params
        flops = 2 * M * C * (3 * dim + 2 * r) + 2 * (2 * M * r * dim)
        bytes_accessed = (x2d.size * x2d.dtype.itemsize
                          + M * 3 * dim * x.dtype.itemsize
                          + sum(a.size * a.dtype.itemsize
                                for a in (w_cat, bias2d, bq_t, bv_t)))
        kernel = functools.partial(_lora_qkv_folded_kernel, dim=dim, rank=r)
        out2d = pl.pallas_call(
            kernel,
            out_shape=out_shape,
            grid=grid,
            in_specs=[x_spec, const(w_cat), const(bias2d), const(bq_t), const(bv_t)],
            out_specs=out_spec,
            compiler_params=cparams,
            cost_estimate=pl.CostEstimate(
                flops=flops, transcendentals=0, bytes_accessed=bytes_accessed),
        )(x2d, w_cat, bias2d, bq_t, bv_t)

    return out2d.reshape(B, N, 3 * dim)


# --------------------------------------------------------------------------- #
# Reference + test
# --------------------------------------------------------------------------- #
def _reference(x, w_qkv, b_qkv, a_q, b_q, a_v, b_v):
    dim = x.shape[-1]
    qkv = jnp.einsum("bnc,oc->bno", x, w_qkv) + b_qkv
    new_q = jnp.einsum("bnr,or->bno", jnp.einsum("bnc,rc->bnr", x, a_q), b_q)
    new_v = jnp.einsum("bnr,or->bno", jnp.einsum("bnc,rc->bnr", x, a_v), b_v)
    qkv = qkv.at[:, :, :dim].add(new_q)
    qkv = qkv.at[:, :, -dim:].add(new_v)
    return qkv


if __name__ == "__main__":
    B, N, C, R = 2, 8, 32, 4  # batch, seq, hidden dim, LoRA rank

    key = jax.random.PRNGKey(0)
    kx, kw, kb, kaq, kbq, kav, kbv = jax.random.split(key, 7)

    x = jax.random.normal(kx, (B, N, C), dtype=jnp.float32)
    # nn.Linear(dim, 3*dim, bias=True)
    w_qkv = jax.random.normal(kw, (3 * C, C), dtype=jnp.float32) * 0.05
    b_qkv = jax.random.normal(kb, (3 * C,), dtype=jnp.float32) * 0.05
    # LoRA A: dim -> r, LoRA B: r -> dim (no bias)
    a_q = jax.random.normal(kaq, (R, C), dtype=jnp.float32) * 0.05
    b_q = jax.random.normal(kbq, (C, R), dtype=jnp.float32) * 0.05
    a_v = jax.random.normal(kav, (R, C), dtype=jnp.float32) * 0.05
    b_v = jax.random.normal(kbv, (C, R), dtype=jnp.float32) * 0.05

    ref = _reference(x, w_qkv, b_qkv, a_q, b_q, a_v, b_v)

    # 1) General path (LoRA kept separate, down-proj folded into the base matmul).
    params = prepare_lora_qkv_params(w_qkv, b_qkv, a_q, b_q, a_v, b_v)
    out = jax.block_until_ready(lora_qkv(x, params))
    assert out.shape == (B, N, 3 * C)
    assert jnp.allclose(out, ref, atol=2e-4, rtol=2e-4), "folded f32 mismatch"

    # 2) Inference fast path: LoRA merged into the base weight (zero extra matmuls).
    params_m = prepare_lora_qkv_params(w_qkv, b_qkv, a_q, b_q, a_v, b_v,
                                       merge_lora=True)
    out_m = jax.block_until_ready(lora_qkv(x, params_m))
    assert jnp.allclose(out_m, ref, atol=2e-4, rtol=2e-4), "merged f32 mismatch"

    # 3) bf16 weights/activations (recommended on v6e/v7x), f32 MXU accumulation.
    params_bf = prepare_lora_qkv_params(w_qkv, b_qkv, a_q, b_q, a_v, b_v,
                                        compute_dtype=jnp.bfloat16)
    out_bf = jax.block_until_ready(lora_qkv(x.astype(jnp.bfloat16), params_bf))
    assert jnp.allclose(out_bf.astype(jnp.float32), ref, atol=5e-2, rtol=5e-2), \
        "folded bf16 mismatch"

    print("KERNEL_OK")
</pallas_src>

<mosaic_0001>
module attributes {stable_mosaic.version = 11 : i64} {
  func.func @_lora_qkv_folded_kernel(%arg0: i32, %arg1: memref<16x32xf32, #tpu.memory_space<vmem>>, %arg2: memref<32x104xf32, #tpu.memory_space<vmem>>, %arg3: memref<1x96xf32, #tpu.memory_space<vmem>>, %arg4: memref<4x32xf32, #tpu.memory_space<vmem>>, %arg5: memref<4x32xf32, #tpu.memory_space<vmem>>, %arg6: memref<16x96xf32, #tpu.memory_space<vmem>>) attributes {dimension_semantics = [#tpu.dimension_semantics<parallel>], iteration_bounds = array<i64: 1>, scalar_prefetch = 0 : i64, scratch_operands = 0 : i64, tpu.core_type = #tpu.core_type<tc>, window_params = [{transform_indices = @transform_0, window_bounds = array<i64: 16, 32>}, {pipeline_mode = #tpu.pipeline_mode<synchronous>, transform_indices = @transform_1, window_bounds = array<i64: 32, 104>}, {pipeline_mode = #tpu.pipeline_mode<synchronous>, transform_indices = @transform_2, window_bounds = array<i64: 1, 96>}, {pipeline_mode = #tpu.pipeline_mode<synchronous>, transform_indices = @transform_3, window_bounds = array<i64: 4, 32>}, {pipeline_mode = #tpu.pipeline_mode<synchronous>, transform_indices = @transform_4, window_bounds = array<i64: 4, 32>}, {transform_indices = @transform_5, window_bounds = array<i64: 16, 96>}]} {
    %c0 = arith.constant 0 : index
    %c0_0 = arith.constant 0 : index
    %0 = vector.load %arg1[%c0, %c0_0] : memref<16x32xf32, #tpu.memory_space<vmem>>, vector<16x32xf32>
    %c0_1 = arith.constant 0 : index
    %c0_2 = arith.constant 0 : index
    %1 = vector.load %arg2[%c0_1, %c0_2] : memref<32x104xf32, #tpu.memory_space<vmem>>, vector<32x104xf32>
    %cst = arith.constant dense<0.000000e+00> : vector<16x104xf32>
    %2 = tpu.matmul %0, %1, %cst {dimension_numbers = #tpu.dot_dimension_numbers<[1], [0], [0], [1], [0, 0, 1, 1], [], []>} : vector<16x32xf32>, vector<32x104xf32>, vector<16x104xf32> -> vector<16x104xf32>
    %3 = vector.extract_strided_slice %2 {offsets = [0, 0], sizes = [16, 96], strides = [1, 1]} : vector<16x104xf32> to vector<16x96xf32>
    %c0_3 = arith.constant 0 : index
    %c0_4 = arith.constant 0 : index
    %4 = vector.load %arg3[%c0_3, %c0_4] : memref<1x96xf32, #tpu.memory_space<vmem>>, vector<1x96xf32>
    %5 = vector.broadcast %4 : vector<1x96xf32> to vector<16x96xf32>
    %6 = arith.addf %3, %5 : vector<16x96xf32>
    %7 = vector.extract_strided_slice %2 {offsets = [0, 96], sizes = [16, 8], strides = [1, 1]} : vector<16x104xf32> to vector<16x8xf32>
    %8 = vector.extract_strided_slice %7 {offsets = [0, 0], sizes = [16, 4], strides = [1, 1]} : vector<16x8xf32> to vector<16x4xf32>
    %c0_5 = arith.constant 0 : index
    %c0_6 = arith.constant 0 : index
    %9 = vector.load %arg4[%c0_5, %c0_6] : memref<4x32xf32, #tpu.memory_space<vmem>>, vector<4x32xf32>
    %cst_7 = arith.constant dense<0.000000e+00> : vector<16x32xf32>
    %10 = tpu.matmul %8, %9, %cst_7 {dimension_numbers = #tpu.dot_dimension_numbers<[1], [0], [0], [1], [0, 0, 1, 1], [], []>} : vector<16x4xf32>, vector<4x32xf32>, vector<16x32xf32> -> vector<16x32xf32>
    %11 = vector.extract_strided_slice %7 {offsets = [0, 4], sizes = [16, 4], strides = [1, 1]} : vector<16x8xf32> to vector<16x4xf32>
    %c0_8 = arith.constant 0 : index
    %c0_9 = arith.constant 0 : index
    %12 = vector.load %arg5[%c0_8, %c0_9] : memref<4x32xf32, #tpu.memory_space<vmem>>, vector<4x32xf32>
    %cst_10 = arith.constant dense<0.000000e+00> : vector<16x32xf32>
    %13 = tpu.matmul %11, %12, %cst_10 {dimension_numbers = #tpu.dot_dimension_numbers<[1], [0], [0], [1], [0, 0, 1, 1], [], []>} : vector<16x4xf32>, vector<4x32xf32>, vector<16x32xf32> -> vector<16x32xf32>
    %14 = vector.extract_strided_slice %6 {offsets = [0, 0], sizes = [16, 32], strides = [1, 1]} : vector<16x96xf32> to vector<16x32xf32>
    %15 = arith.addf %14, %10 : vector<16x32xf32>
    %c0_11 = arith.constant 0 : index
    %c0_12 = arith.constant 0 : index
    %16 = vector.load %arg6[%c0_11, %c0_12] : memref<16x96xf32, #tpu.memory_space<vmem>>, vector<16x32xf32>
    tpu.vector_store %arg6[%c0_11, %c0_12], %15 {strides = array<i32>} : memref<16x96xf32, #tpu.memory_space<vmem>>, vector<16x32xf32>,
    %17 = vector.extract_strided_slice %6 {offsets = [0, 32], sizes = [16, 32], strides = [1, 1]} : vector<16x96xf32> to vector<16x32xf32>
    %c0_13 = arith.constant 0 : index
    %c32 = arith.constant 32 : index
    %18 = vector.load %arg6[%c0_13, %c32] : memref<16x96xf32, #tpu.memory_space<vmem>>, vector<16x32xf32>
    tpu.vector_store %arg6[%c0_13, %c32], %17 {strides = array<i32>} : memref<16x96xf32, #tpu.memory_space<vmem>>, vector<16x32xf32>,
    %19 = vector.extract_strided_slice %6 {offsets = [0, 64], sizes = [16, 32], strides = [1, 1]} : vector<16x96xf32> to vector<16x32xf32>
    %20 = arith.addf %19, %13 : vector<16x32xf32>
    %c0_14 = arith.constant 0 : index
    %c64 = arith.constant 64 : index
    %21 = vector.load %arg6[%c0_14, %c64] : memref<16x96xf32, #tpu.memory_space<vmem>>, vector<16x32xf32>
    tpu.vector_store %arg6[%c0_14, %c64], %20 {strides = array<i32>} : memref<16x96xf32, #tpu.memory_space<vmem>>, vector<16x32xf32>,
    return
  }
  func.func @transform_0(%arg0: i32) -> (i32, i32) {
    %c0_i32 = arith.constant 0 : i32
    %c0_i32_0 = arith.constant 0 : i32
    return %arg0, %c0_i32 : i32, i32
  }
  func.func @transform_1(%arg0: i32) -> (i32, i32) {
    %c0_i32 = arith.constant 0 : i32
    %c0_i32_0 = arith.constant 0 : i32
    %c0_i32_1 = arith.constant 0 : i32
    return %c0_i32, %c0_i32_0 : i32, i32
  }
  func.func @transform_2(%arg0: i32) -> (i32, i32) {
    %c0_i32 = arith.constant 0 : i32
    %c0_i32_0 = arith.constant 0 : i32
    %c0_i32_1 = arith.constant 0 : i32
    return %c0_i32, %c0_i32_0 : i32, i32
  }
  func.func @transform_3(%arg0: i32) -> (i32, i32) {
    %c0_i32 = arith.constant 0 : i32
    %c0_i32_0 = arith.constant 0 : i32
    %c0_i32_1 = arith.constant 0 : i32
    return %c0_i32, %c0_i32_0 : i32, i32
  }
  func.func @transform_4(%arg0: i32) -> (i32, i32) {
    %c0_i32 = arith.constant 0 : i32
    %c0_i32_0 = arith.constant 0 : i32
    %c0_i32_1 = arith.constant 0 : i32
    return %c0_i32, %c0_i32_0 : i32, i32
  }
  func.func @transform_5(%arg0: i32) -> (i32, i32) {
    %c0_i32 = arith.constant 0 : i32
    %c0_i32_0 = arith.constant 0 : i32
    return %arg0, %c0_i32 : i32, i32
  }
}

</mosaic_0001>

<bundles_post_ra>
// kernel: tpu_custom_call.1
= control target key start
LH: loop header
LB: loop body
LE: loop exit
PB: predicated region body
PF: predicated region fallthrough
CT: control target
= control target key end

     0   :  { %10 = vsyncpa [#allocation3], 0  ;;  %s592_s0 = inlined_call_operand.hbm [shape: f32[16,32], index: 0, kind: input, shape index: {}]   ;;  %s593_s1 = inlined_call_operand.hbm [shape: f32[32,104], index: 1, kind: input, shape index: {}]   ;;  %s594_s2 = inlined_call_operand.vmem [shape: f32[1,96], index: 2, kind: input, shape index: {}]   ;;  %s595_s3 = inlined_call_operand.vmem [shape: f32[4,32], index: 3, kind: input, shape index: {}]   ;;  %s596_s4 = inlined_call_operand.vmem [shape: f32[4,32], index: 4, kind: input, shape index: {}]   ;;  %s597_s5 = inlined_call_operand.hbm [shape: f32[16,96], index: 5, kind: output, shape index: {}]  }
   0x1   :  { %11 = vsyncpa [#allocation6], 0 }
   0x2   :  { %12 = vsyncpa [#allocation4], 0  ;;  %s492_s18 = smov [#allocation2]   ;;  %s420_s22 = scalar_lea.hbm %s592_s0, 256 }
   0x3   :  { %s18_s19 = sshll.u32 %s492_s18, 4  ;;  %p421_p0 = scmp.ne.s32.totalorder %s592_s0, %s420_s22  ;;  %s19_s19 = int_to_ptr.vmem [resolvable:$true] %s18_s19 }
   0x4   :  { %p424_p1 = scmp.lt.u32.totalorder %s420_s22, %s592_s0 }
   0x6   :  { %p426_p2 = pnand %p424_p1, %p421_p0 }
   0x8   :  { %429 = shalt.err (!%p426_p2)
}
   0x9   :  { %s430_s27 = scalar_lea.vmem %s19_s19, 256  ;;  %p435_p4 = scmp.lt.s32.totalorder %s19_s19, %s19_s19 }
   0xa   :  { %p431_p3 = scmp.ne.s32.totalorder %s19_s19, %s430_s27  ;;  %p436_p5 = scmp.lt.s32.totalorder %s430_s27, %s430_s27 }
   0xc   :  { %p437_p6 = por %p436_p5, %p435_p4 }
   0xe   :  { %p438_p7 = pnand %p437_p6, %p431_p3 }
  0x10   :  { %441 = shalt.err (!%p438_p7)
}
  0x11   :  { %s493_s28 = smov 128   ;;  %s494_s29 = smov 8  }
  0x12   :  { %24 = dma.hbm_to_vmem [thread:$0]  %s592_s0, 256, %s19_s19, [#allocation3], %s493_s28, %s493_s28, %s494_s29  }
  0x13   :  { %s495_s7 = smov [#allocation5]   ;;  %s442_s11 = scalar_lea.hbm %s593_s1, 512 }
  0x14   :  { %s30_s8 = sshll.u32 %s495_s7, 4  ;;  %p443_p8 = scmp.ne.s32.totalorder %s593_s1, %s442_s11  ;;  %s31_s8 = int_to_ptr.vmem [resolvable:$true] %s30_s8 }
  0x15   :  { %p446_p9 = scmp.lt.u32.totalorder %s442_s11, %s593_s1 }
  0x17   :  { %p448_p10 = pnand %p446_p9, %p443_p8 }
  0x19   :  { %451 = shalt.err (!%p448_p10)
}
  0x1a   :  { %s452_s16 = scalar_lea.vmem %s31_s8, 512  ;;  %p457_p12 = scmp.lt.s32.totalorder %s31_s8, %s31_s8 }
  0x1b   :  { %p453_p11 = scmp.ne.s32.totalorder %s31_s8, %s452_s16  ;;  %p458_p13 = scmp.lt.s32.totalorder %s452_s16, %s452_s16 }
  0x1d   :  { %p459_p0 = por %p458_p13, %p457_p12 }
  0x1f   :  { %p460_p1 = pnand %p459_p0, %p453_p11 }
  0x21   :  { %463 = shalt.err (!%p460_p1)
}
  0x22   :  { %36 = dma.hbm_to_vmem [thread:$0]  %s593_s1, 512, %s31_s8, [#allocation6], %s493_s28, %s493_s28, %s494_s29  }
  0x23   :  { %486 = dma.done.wait [#allocation3], 256  }
  0x24   :  { %487 = vsyncadd [#allocation3], 4294967040 }
  0x25   :  { %488 = dma.done.wait [#allocation6], 512  }
  0x26   :  { %489 = vsyncadd [#allocation6], 4294966784  ;;  %vm55_vm0 = vcmask 261120   ;;  %v51_v0 = vld [vmem:[#allocation5] sm:$0xff]  ;;  %v52_v1 = vld [vmem:[#allocation5 + $0x8] sm:$0xff]  ;;  %vm158_vm1 = vcmask 1043456  }
  0x27   :  { %v53_v2 = vld [vmem:[#allocation5 + $0x10] sm:$0xff]  ;;  %v404_v3 = vpack.c.bf16 %v52_v1, %v51_v0  ;;  %v54_v4 = vld [vmem:[#allocation5 + $0x18] sm:$0xff]  ;;  %s496_s21 = smov 28   ;;  %s497_s22 = smov 32   ;;  %vm153_vm2 = vcmask 31744   ;;  %vm328_vm3 = vcmask 523520  }
  0x28   :  { %v49_v5 = vld [vmem:[#allocation2] sm:$0xff]  ;;  %v408_v6 = vpack.c.bf16 %v54_v4, %v53_v2  ;;  %v50_v7 = vld [vmem:[#allocation2 + $0x8] sm:$0xff]  ;;  %s498_s23 = smov 64   ;;  %s499_s24 = smov [#allocation7]   ;;  %vm341_vm4 = vcmask 785920  }
  0x29   :  { %391 = vmatprep.mubr.msk.f32.mxu0 %vm55_vm0, %v49_v5  ;;  %405 = vmatprep.subr.bf16.mxu0 %v404_v3  ;;  %v146_v8 = vld [vmem:[%s595_s3] sm:$0xf] }
  0x2a   :  { %407 = vmatpush3.bf16.msra.mxu0 %v404_v3  ;;  %v237_v9 = vld [vmem:[%s596_s4] sm:$0xf]  ;;  %394 = vmatprep.subr.msk.mxu1 %vm158_vm1, %v146_v8 }
  0x2b   :  { %409 = vmatprep.subr.bf16.mxu0 %v408_v6  ;;  %395 = vmatpush3.msk.msra.mxu1 %vm158_vm1, %v146_v8  ;;  %v364_v16 = vld [vmem:[%s594_s2] ss:$0 sm:$0xff]  ;;  %s349_s2 = sshll.u32 %s499_s24, 4  ;;  %s350_s2 = int_to_ptr.vmem [resolvable:$true] %s349_s2 }
  0x2c   :  { %399 = vmatprep.subr.msk.mxu1 %vm158_vm1, %v237_v9  ;;  %s464_s25 = scalar_lea.vmem %s350_s2, 256  ;;  %p469_p3 = scmp.lt.s32.totalorder %s350_s2, %s350_s2 }
  0x2d   :  { %p465_p2 = scmp.ne.s32.totalorder %s350_s2, %s464_s25  ;;  %p470_p4 = scmp.lt.s32.totalorder %s464_s25, %s464_s25 }
  0x2e   :  { %411 = vmatpush3.bf16.msra.mxu0 %v408_v6 }
  0x2f   :  { %p471_p5 = por %p470_p4, %p469_p3 }
  0x31   :  { %392 = vmatmul.mubr.msk.f32.vlgmr.msra.gmra.mrb[0].mxu0 %vm55_vm0, %v50_v7  ;;  %p472_p6 = pnand %p471_p5, %p465_p2 }
 0x104   :  { %v393_v10 = vpop.f32.mrb[0].mxu0 }
 0x105   :  { %v128_v11 = vpop.f32.mrb[1].mxu0  ;;  %v145_v17 = vadd.f32 %v393_v10, %v364_v16 }
 0x106   :  { %238 = vrot.lane.b32.xlu1 %v128_v11, %s496_s21  ;;  %149 = vrot.lane.b32.xlu0 %v128_v11, %s497_s22  ;;  %v144_v18 = vadd.f32 %v364_v16, %v128_v11 }
 0x10a   :  { %240 = vrot.lane.b32.xlu1 %v393_v10, %s496_s21  ;;  %151 = vrot.lane.b32.xlu0 %v393_v10, %s497_s22 }
 0x178   :  { %v150_v12 = vpop.permute.xlu0 %149  ;;  %v239_v13 = vpop.permute.xlu1 %238 }
 0x179   :  { %396 = vmatprep.mubr.msk.f32.mxu1 %vm153_vm2, %v150_v12 }
 0x17c   :  { %v152_v14 = vpop.permute.xlu0 %151  ;;  %v241_v15 = vpop.permute.xlu1 %240 }
 0x17d   :  { %397 = vmatmul.mubr.msk.f32.vlgmr.msra.gmra.mrb[0].mxu1 %vm153_vm2, %v152_v14 }
 0x17e   :  { %400 = vmatpush3.msk.msra.mxu1 %vm158_vm1, %v237_v9  ;;  %401 = vmatprep.mubr.msk.f32.mxu1 %vm153_vm2, %v239_v13 }
 0x181   :  { %402 = vmatmul.mubr.msk.f32.vlgmr.msra.gmra.mrb[2].mxu1 %vm153_vm2, %v241_v15 }
 0x250   :  { %v398_v19 = vpop.f32.mrb[0].mxu1 }
 0x251   :  { %v325_v20 = vadd.f32 %v398_v19, %v145_v17  ;;  %v228_v21 = vpop.f32.mrb[1].mxu1 }
 0x252   :  { %v324_v22 = vadd.f32 %v228_v21, %v144_v18 }
 0x253   :  { %327 = vst.msk [vmem:[#allocation7 + $0x8] sm:$0xff] %vm55_vm0, %v325_v20 }
 0x254   :  { %326 = vst.msk [vmem:[#allocation7] sm:$0xff] %vm55_vm0, %v324_v22  ;;  %v403_v23 = vpop.f32.mrb[2].mxu1 }
 0x255   :  { %330 = vst.msk [vmem:[#allocation7 + $0x8] sm:$0xff] %vm328_vm3, %v145_v17  ;;  %335 = vrot.lane.b32.xlu1 %v403_v23, %s498_s23  ;;  %v315_v24 = vpop.f32.mrb[3].mxu1  ;;  %329 = vst.msk [vmem:[#allocation7] sm:$0xff] %vm328_vm3, %v144_v18 }
 0x256   :  { %333 = vrot.lane.b32.xlu0 %v315_v24, %s498_s23 }
 0x2c7   :  { %v336_v25 = vpop.permute.xlu1 %335 }
 0x2c8   :  { %v340_v26 = vadd.f32 %v336_v25, %v145_v17  ;;  %v334_v27 = vpop.permute.xlu0 %333 }
 0x2c9   :  { %v339_v28 = vadd.f32 %v334_v27, %v144_v18 }
 0x2ca   :  { %343 = vst.msk [vmem:[#allocation7 + $0x8] sm:$0xff] %vm341_vm4, %v340_v26 }
 0x2cb   :  { %342 = vst.msk [vmem:[#allocation7] sm:$0xff] %vm341_vm4, %v339_v28 }
 0x2cc   :  { %475 = shalt.err (!%p472_p6)
}
 0x2cd   :  { %s476_s30 = scalar_lea.hbm %s597_s5, 256 }
 0x2ce   :  { %p477_p7 = scmp.ne.s32.totalorder %s597_s5, %s476_s30  ;;  %p480_p8 = scmp.lt.u32.totalorder %s476_s30, %s597_s5 }
 0x2d0   :  { %p482_p9 = pnand %p480_p8, %p477_p7 }
 0x2d2   :  { %485 = shalt.err (!%p482_p9)
}
 0x2d3   :  { %355 = dma.vmem_to_hbm [thread:$0]  %s350_s2, 256, %s597_s5, [#allocation4], %s493_s28, %s493_s28, %s494_s29  }
 0x2d4   :  { %490 = dma.done.wait [#allocation4], 256  }
 0x2d5   :  { %491 = vsyncadd [#allocation4], 4294967040 }
 0x2d6   :  { %359 = vsyncpa [#allocation3], 1 }
 0x2d7   :  { %360 = vsyncpa [#allocation6], 1 }
 0x2d8   :  { %361 = vsyncpa [#allocation4], 1 }

</bundles_post_ra>
